<compile_context>
chip_gen: v5e
topology: v5e:2x2
jax: 0.10.0
libtpu: 0.0.40
codegen_flags: <defaults>
</compile_context>

<pallas_src>
import math

import jax
import jax.numpy as jnp
from jax import lax
from jax.experimental import pallas as pl
from jax.experimental.pallas import tpu as pltpu


_XLA_FAST_PATH_BYTES = 1 << 20   # below this, launch/per-step overhead dominates
_SLAB_CAP_BYTES = 2 << 20        # max size of the resident replication slab
_COPY_CHUNK_BYTES = 128 << 10    # target size of each in-kernel copy statement


def _vmem_capacity_bytes():
    """Chip VMEM capacity; falls back to the smallest current part (v7x: 64 MiB/TC)."""
    try:
        cap = getattr(pltpu.get_tpu_info(), "vmem_capacity_bytes", None)
        if cap:
            return int(cap)
    except Exception:
        pass
    return 64 << 20


def _pick_rows_per_step(s_lead, s_last, g, packing, bytes_per_group, budget):
    """Row-groups of the (s_lead*s_last, W_out) output written per grid step.

    d must divide s_lead, be a multiple of the slab granule g, and give a block
    sublane dim d*s_last that is a multiple of the dtype packing (or d == s_lead).
    Preference (largest d within the first non-empty tier):
      1. grid length even and >= 4  -> >= 2 double-buffered blocks per v7x TensorCore,
      2. grid length >= 2           -> compute/writeback overlap on 1-core chips,
      3. anything that fits the VMEM budget.
    Returns None if nothing fits (caller falls back to plain XLA).
    """
    cands = [d for d in range(1, s_lead + 1)
             if s_lead % d == 0 and d % g == 0
             and ((d * s_last) % packing == 0 or d == s_lead)]
    fitting = [d for d in cands if d * bytes_per_group <= budget]
    if not fitting:
        # TODO(synk): a lane-axis grid split would handle huge row-groups; for now we
        # fall back to XLA rather than risk a VMEM-limit compile failure.
        return None
    for pred in (lambda m: m % 2 == 0 and m >= 4,
                 lambda m: m >= 2,
                 lambda m: True):
        ok = [d for d in fitting if pred(s_lead // d)]
        if ok:
            return max(ok)
    return max(fitting)


def _make_fpe_kernel(reps, slab_rows, chunks):
    """Replicate the resident slab `reps` times down the output block.

    Each replication is a short static sequence of bounded, sublane-aligned
    sub-copies, so only a small source tile is ever live (no block-sized temp).
    """
    def copy_slab(slab_ref, out_ref, base):
        for off, sz in chunks:                                   # static, small
            out_ref[pl.ds(base + off, sz), :] = slab_ref[pl.ds(off, sz), :]

    if reps <= 8:
        def kernel(slab_ref, out_ref):
            for r in range(reps):                                # fully static offsets
                copy_slab(slab_ref, out_ref, r * slab_rows)
    else:
        def kernel(slab_ref, out_ref):
            def body(r, carry):
                copy_slab(slab_ref, out_ref,
                          pl.multiple_of(r * slab_rows, slab_rows))
                return carry
            lax.fori_loop(0, reps, body, 0)
    return kernel


def factorized_position_embedding(weights, num_embeds, squeeze_dims):
    """Port of FactorizedPositionEmbedding.forward().

    weights[i] has shape (num_embeds[i] * squeeze_dims[i], embed_dims) (or (1, E) when
    squeeze_dims is falsy), matching the reference nn.Embedding tables.  The returned
    value matches the reference exactly and depends only on weights[-1].
    """
    num_embeds = tuple(int(s) for s in num_embeds)
    n = len(num_embeds)
    assert len(weights) == n and n >= 1
    E = weights[-1].shape[-1]

    if not squeeze_dims:
        # squeeze_dims=None: every table is a single row; the reference skips the
        # permute/flatten branch and returns the last table as (1, 1, ..., 1, E).
        for w in weights:
            assert w.shape == (1, E), w.shape
        return weights[-1].reshape((1,) + (1,) * n + (E,))

    squeeze_dims = tuple(int(q) for q in squeeze_dims)
    assert len(squeeze_dims) == n
    for w, s, q in zip(weights, num_embeds, squeeze_dims):
        # Leading tables never reach the returned value (dead code in the reference
        # forward) but are shape-checked for interface parity.
        assert w.shape == (s * q, E), (w.shape, s, q, E)

    s_last, q_last = num_embeds[-1], squeeze_dims[-1]
    s_lead = math.prod(num_embeds[:-1])
    q_lead = math.prod(squeeze_dims[:-1])
    total_pos = s_lead * s_last * q_lead * q_last

    w_last = weights[-1]
    dtype = w_last.dtype
    itemsize = jnp.dtype(dtype).itemsize
    W2 = q_last * E                       # lanes of one flattened last-factor row group
    W_out = q_lead * W2                   # lanes of one output row (final, lane-dense layout)
    table = w_last.reshape(s_last, W2)    # free, contiguous reshape
    out_bytes = s_lead * s_last * W_out * itemsize

    def xla_path():
        # out2d[r, c] = table[r % s_last, c % W2]; byte-identical to the final layout.
        return jnp.tile(table, (s_lead, q_lead)).reshape(1, total_pos, E)

    # Tiny outputs (or no row replication at all): a Pallas grid is pure overhead.
    if s_lead == 1 or out_bytes <= _XLA_FAST_PATH_BYTES:
        return xla_path()

    # --- Pallas path: store-only, HBM-write-bound replication --------------------
    packing = max(8, 32 // itemsize)      # sublane packing: f32 8, bf16 16, int8/fp8 32
    # Replication slab = g row-groups, pre-tiled ONCE by XLA so in-kernel store
    # offsets are sublane-aligned and the per-step body does no lane tiling.
    g = math.lcm(s_last, packing) // s_last
    if s_lead % g != 0 or g * s_last * W_out * itemsize > _SLAB_CAP_BYTES:
        g = 1
    slab_rows = g * s_last
    slab = jnp.tile(table, (g, q_lead))   # (slab_rows, W_out), tiny one-time XLA op
    slab_bytes = slab_rows * W_out * itemsize

    # Chip-derived VMEM accounting: double-buffered output block + double-buffered
    # (tiny) slab input + margin must fit under the scoped-VMEM limit.
    vmem_limit = min(_vmem_capacity_bytes() * 3 // 4, 100 << 20)   # 48 MiB v7x, 96 MiB v5e/v6e
    out_block_budget = (vmem_limit - 2 * slab_bytes - (2 << 20)) // 2

    bytes_per_group = s_last * W_out * itemsize
    d = _pick_rows_per_step(s_lead, s_last, g, packing, bytes_per_group, out_block_budget)
    if d is None:
        return xla_path()                 # nothing tiles cleanly into VMEM
    reps = d // g

    # Bound each copy statement to ~_COPY_CHUNK_BYTES of source (packing-aligned) so
    # Mosaic never holds a large tile live (replaces the old full-block jnp.tile).
    rows_cap = max(1, _COPY_CHUNK_BYTES // max(1, W_out * itemsize))
    rows_cap = max(packing, (rows_cap // packing) * packing)
    chunk_rows = min(slab_rows, rows_cap)
    chunks = tuple((off, min(chunk_rows, slab_rows - off))
                   for off in range(0, slab_rows, chunk_rows))

    out2d = pl.pallas_call(
        _make_fpe_kernel(reps, slab_rows, chunks),
        out_shape=jax.ShapeDtypeStruct((s_lead * s_last, W_out), dtype),
        grid=(s_lead // d,),
        in_specs=[
            # Full slab with a constant block index -> fetched once, resident across
            # steps (double-buffering it would also be fine; it is tiny).
            pl.BlockSpec((slab_rows, W_out), lambda i: (0, 0)),
        ],
        # Lane-dense output rows already in the FINAL layout; trailing reshape is free.
        out_specs=pl.BlockSpec((d * s_last, W_out), lambda i: (i, 0)),
        compiler_params=pltpu.CompilerParams(
            dimension_semantics=("parallel",),   # megacore-shardable on v7x
            vmem_limit_bytes=int(vmem_limit),
        ),
    )(slab)

    return out2d.reshape(1, total_pos, E)


def _reference(weights, num_embeds, squeeze_dims):
    """Pure-JAX transcription of the PyTorch forward's returned value."""
    n = len(num_embeds)
    E = weights[-1].shape[-1]
    if not squeeze_dims:
        return weights[-1].reshape((1,) + (1,) * n + (E,))
    dims = [s * q for s, q in zip(num_embeds, squeeze_dims)]
    shape = [1] * n
    shape[-1] = dims[-1]
    embed = jnp.broadcast_to(weights[-1].reshape(1, *shape, E), (1, *dims, E))
    inter = []
    for s, q in zip(num_embeds, squeeze_dims):
        inter += [s, q]
    embed = embed.reshape(1, *inter, E)
    perm = (0,) + tuple(2 * i + 1 for i in range(n)) \
               + tuple(2 * i + 2 for i in range(n)) + (2 * n + 1,)
    return jnp.transpose(embed, perm).reshape(1, -1, E)


if __name__ == "__main__":
    key = jax.random.PRNGKey(0)

    # Case 1: large enough to exercise the Pallas path (2 MiB output, still small).
    num_embeds, squeeze_dims, embed_dims = (128, 8), (2, 2), 128
    k0, k1 = jax.random.split(key)
    w0 = jax.random.normal(k0, (num_embeds[0] * squeeze_dims[0], embed_dims), jnp.float32)
    w1 = jax.random.normal(k1, (num_embeds[1] * squeeze_dims[1], embed_dims), jnp.float32)
    out = jax.block_until_ready(
        factorized_position_embedding([w0, w1], num_embeds, squeeze_dims))
    ref = _reference([w0, w1], num_embeds, squeeze_dims)
    assert out.shape == ref.shape == (1, 128 * 8 * 2 * 2, embed_dims), out.shape
    assert out.dtype == jnp.float32
    assert jnp.array_equal(out, ref), "Pallas path mismatch vs reference semantics"

    # Case 2: tiny shapes from the original demo -> XLA fast path (same semantics).
    num_embeds2, squeeze_dims2, embed_dims2 = (8, 4), (2, 2), 32
    k2, k3 = jax.random.split(k1)
    v0 = jax.random.normal(k2, (num_embeds2[0] * squeeze_dims2[0], embed_dims2), jnp.float32)
    v1 = jax.random.normal(k3, (num_embeds2[1] * squeeze_dims2[1], embed_dims2), jnp.float32)
    out2 = jax.block_until_ready(
        factorized_position_embedding([v0, v1], num_embeds2, squeeze_dims2))
    ref2 = _reference([v0, v1], num_embeds2, squeeze_dims2)
    assert jnp.array_equal(out2, ref2), "fast-path mismatch vs reference semantics"

    print("KERNEL_OK")
</pallas_src>

<mosaic_0001>
module attributes {stable_mosaic.version = 11 : i64} {
  func.func @kernel(%arg0: i32, %arg1: memref<8x512xf32, #tpu.memory_space<vmem>>, %arg2: memref<256x512xf32, #tpu.memory_space<vmem>>) attributes {dimension_semantics = [#tpu.dimension_semantics<parallel>], iteration_bounds = array<i64: 4>, scalar_prefetch = 0 : i64, scratch_operands = 0 : i64, tpu.core_type = #tpu.core_type<tc>, window_params = [{pipeline_mode = #tpu.pipeline_mode<synchronous>, transform_indices = @transform_0, window_bounds = array<i64: 8, 512>}, {transform_indices = @transform_1, window_bounds = array<i64: 256, 512>}]} {
    %c0_i32 = arith.constant 0 : i32
    %c32_i32 = arith.constant 32 : i32
    %0 = arith.addi %c0_i32, %c32_i32 : i32
    %c1_i32 = arith.constant 1 : i32
    scf.for %arg3 = %c0_i32 to %0 step %c1_i32  : i32 {
      %c8_i32 = arith.constant 8 : i32
      %1 = arith.muli %arg3, %c8_i32 : i32
      %2 = tpu.assume_multiple %1, 8 : i32
      %c0 = arith.constant 0 : index
      %c0_1 = arith.constant 0 : index
      %3 = vector.load %arg1[%c0, %c0_1] : memref<8x512xf32, #tpu.memory_space<vmem>>, vector<8x512xf32>
      %c0_i32_2 = arith.constant 0 : i32
      %4 = arith.addi %2, %c0_i32_2 : i32
      %5 = arith.index_cast %4 : i32 to index
      %c0_3 = arith.constant 0 : index
      %6 = vector.load %arg2[%5, %c0_3] : memref<256x512xf32, #tpu.memory_space<vmem>>, vector<8x512xf32>
      tpu.vector_store %arg2[%5, %c0_3], %3 {strides = array<i32>} : memref<256x512xf32, #tpu.memory_space<vmem>>, vector<8x512xf32>,
    }
    %c32_i32_0 = arith.constant 32 : i32
    return
  }
  func.func @transform_0(%arg0: i32) -> (i32, i32) {
    %c0_i32 = arith.constant 0 : i32
    %c0_i32_0 = arith.constant 0 : i32
    %c0_i32_1 = arith.constant 0 : i32
    return %c0_i32, %c0_i32_0 : i32, i32
  }
  func.func @transform_1(%arg0: i32) -> (i32, i32) {
    %c0_i32 = arith.constant 0 : i32
    %c0_i32_0 = arith.constant 0 : i32
    return %arg0, %c0_i32 : i32, i32
  }
}

</mosaic_0001>

<bundles_post_ra>
// kernel: tpu_custom_call.1
= control target key start
LH: loop header
LB: loop body
LE: loop exit
PB: predicated region body
PF: predicated region fallthrough
CT: control target
= control target key end

     0   :  { %6 = vsyncpa [#allocation3], 0  ;;  %s498_s0 = inlined_call_operand.hbm [shape: f32[8,512], index: 0, kind: input, shape index: {}]   ;;  %s499_s1 = inlined_call_operand.hbm [shape: f32[1024,512], index: 1, kind: output, shape index: {}]  }
   0x1   :  { %7 = vsyncpa [#allocation4], 0 }
   0x2   :  { %9 = vsyncpa [#allocation4 + $0x1], 0  ;;  %s414_s6 = smov 0   ;;  %s416_s7 = smov 0  }
   0x3   :  { %s418_s8 = smov 0   ;;  %s420_s9 = smov 0  }
   0x4 LB: > { %s435_s10 = sadd.s32 4294967295, %s395_s9   ;;  %s217_s11 = sadd.s32 4294967294, %s395_s9   ;;  %s395_s9 = sphi %s420_s9, %s505_s9   ;;  %s391_s8 = sphi %s418_s8, %s504_s8   ;;  %s387_s7 = sphi %s416_s7, %s503_s7   ;;  %s383_s6 = sphi %s414_s6, %s502_s6  }
   0x5   : > { %s439_s12 = sadd.s32 1, %s395_s9   ;;  %s43_s13 = sadd.s32 1, %s391_s8 }
   0x6   : > { %s40_s14 = ssub.s32 %s395_s9, %s439_s12  ;;  %p53_p0 = scmp.ne.s32.totalorder %s391_s8, %s387_s7 }
   0x7   : > { %p41_p1 = scmp.eq.s32.totalorder %s40_s14, 0  ;;  %p54_p2 = scmp.eq.s32.totalorder %s435_s10, 3 }
   0x8   : > { %p59_p3 = scmp.ne.s32.totalorder %s387_s7, %s383_s6  ;;  %p60_p4 = scmp.eq.s32.totalorder %s217_s11, 3 }
   0x9   : > { %s450_s15 = scalar_select %p41_p1, %s391_s8, %s43_s13  }
   0xa   : > { %p452_p5 = por %p54_p2, %p53_p0  ;;  %p456_p6 = por %p60_p4, %p59_p3 }
   0xb   : > { %p218_p7 = scmp.ge.s32.totalorder %s395_s9, 1  ;;  %p67_p8 = scmp.lt.s32.totalorder %s395_s9, 5 }
   0xc   : > { %p249_p9 = scmp.eq.s32.totalorder %s435_s10, 0  ;;  %s79_s20 = sshll.u32 %s498_s0, 4  ;;  %s80_s20 = int_to_ptr.hbm [resolvable:$true] %s79_s20 }
   0xd   : > { %p68_p10 = pnand %p218_p7, %p67_p8  ;;  %s401_s21 = smov [#allocation2]  }
   0xe   : > { %s81_s22 = sshll.u32 %s401_s21, 4  ;;  %s82_s22 = int_to_ptr.vmem [resolvable:$true] %s81_s22 }
   0xf   : > { %p241_p11 = pneg %p68_p10  ;;  %94 = sbr.rel (%p68_p10) target bundleno = 43 (0x2b), region = 24 }
  0x11   : > { %p242_p12 = pnand %p249_p9, %p241_p11 }
  0x13   : > { %244 = dma.hbm_to_vmem [thread:$0]  (!%p242_p12), %s80_s20, 512, %s82_s22, [#allocation3]  }
  0x14   : > { %374 = dma.done.wait (%p249_p9), [#allocation3], 512  }
  0x15   : > { %376 = vsyncadd (%p249_p9), [#allocation3], 4294966784  ;;  %s107_s23 = sand.u32 1, %s387_s7   ;;  %s397_s26 = smov 0  }
  0x16   : > { %s222_s24 = sshll.u32 %s107_s23, 10 }
  0x17   : > { %s109_s25 = scalar_lea.vmem [#allocation5], %s222_s24 }
  0x18 LB: >> { %s223_s27 = sshll.u32 %s399_s26, 3  ;;  %v118_v0 = vld [vmem:[#allocation2] sm:$0xff]  ;;  %v119_v1 = vld [vmem:[#allocation2 + $0x8] sm:$0xff]  ;;  %v120_v2 = vld [vmem:[#allocation2 + $0x10] sm:$0xff]  ;;  %s116_s26 = sadd.s32 1, %s399_s26   ;;  %s399_s26 = sphi %s397_s26, %s116_s26  }
  0x19   : >> { %s122_s28 = sshra.s32 %s223_s27, 3  ;;  %v121_v3 = vld [vmem:[#allocation2 + $0x18] sm:$0xff]  ;;  %p113_p13 = scmp.ge.s32.totalorder %s116_s26, 32  }
  0x1a   : >> { %s232_s29 = sshll.u32 %s122_s28, 5  ;;  %s234_s2 = sshll.u32 (%p113_p13), %s435_s10, 10 }
  0x1b   : >> { %s126_s30 = scalar_lea.vmem %s109_s25, %s232_s29 [#allocation5]  ;;  %115 = sbr.rel (!%p113_p13) target bundleno = 24 (0x18), region = 69 }
  0x1c   : >> { %127 = vst [vmem:[%s126_s30] sm:$0xff] %v118_v0  ;;  %s144_s5 = scalar_lea.hbm (%p113_p13), %s499_s1, %s234_s2  ;;  %s145_s11 = sshll.u32 (%p113_p13), %s109_s25, 4  ;;  %s146_s11 = int_to_ptr.vmem [resolvable:$true] %s145_s11 }
  0x1d   : >> { %128 = vst [vmem:[%s126_s30 + $0x8] sm:$0xff] %v119_v1  ;;  %s147_s13 = sshll.u32 (%p113_p13), %s144_s5, 4  ;;  %s132_s14 = scalar_lea.sflag (%p113_p13), [#allocation4], %s107_s23  ;;  %s148_s13 = int_to_ptr.hbm [resolvable:$true] %s147_s13 }
  0x1e   : >> { %129 = vst [vmem:[%s126_s30 + $0x10] sm:$0xff] %v120_v2  ;;  %s339_s18 = sshra.s32 (%p113_p13), %s148_s13, 4  ;;  %s345_s10 = scalar_lea.hbm (%p113_p13), %s499_s1, 4096  ;;  %s340_s18 = int_to_ptr.hbm [resolvable:$true] %s339_s18 }
  0x1f   : >> { %130 = vst [vmem:[%s126_s30 + $0x18] sm:$0xff] %v121_v3  ;;  %s341_s19 = scalar_lea.hbm (%p113_p13), %s340_s18, 1024  ;;  %p346_p3 = scmp.lt.s32.totalorder (%p113_p13), %s340_s18, %s499_s1 }
  0x20   : > { %p342_p0 = scmp.ne.s32.totalorder %s340_s18, %s341_s19  ;;  %p347_p4 = scmp.lt.s32.totalorder %s345_s10, %s341_s19 }
  0x22   : > { %p343_p1 = pnand %p342_p0, %p452_p5  ;;  %p348_p7 = por %p347_p4, %p346_p3 }
  0x24   : > { %p344_p2 = pneg %p343_p1 }
  0x26   : > { %p349_p8 = pnand %p348_p7, %p344_p2 }
  0x28   : > { %352 = shalt.err (!%p349_p8)
}
  0x29   : > { %s402_s23 = smov 512   ;;  %s403_s25 = smov 32  }
  0x2a   : > { %239 = dma.vmem_to_hbm [thread:$0]  (%p452_p5), %s146_s11, 16384, %s148_s13, %s132_s14, %s402_s23, %s402_s23, %s403_s25  }
  0x2b PF: > { %p251_p9 = scmp.ge.s32.totalorder %s395_s9, 2  ;;  %s162_s26 = sand.u32 1, %s383_s6  }
  0x2c   : > { %s163_s27 = scalar_lea.sflag [#allocation4], %s162_s26 }
  0x2d   : > { %p246_p10 = pnand %p251_p9, %p456_p6 }
  0x2f   : > { %p247_p11 = pneg %p246_p10 }
  0x31   : > { %378 = dma.done.wait (%p247_p11), %s163_s27, 16384  }
  0x32   : > { %380 = vsyncadd (%p247_p11), %s163_s27, 4294950912  ;;  %p12_p12 = scmp.ge.s32.totalorder %s439_s12, 6   ;;  %s502_s6 = smov %s387_s7 }
  0x33   : > { %s503_s7 = smov %s391_s8  ;;  %s504_s8 = smov %s450_s15 }
  0x34   : > { %s505_s9 = smov %s439_s12  ;;  %14 = sbr.rel (!%p12_p12) target bundleno = 4 (0x4), region = 80 }
  0x39   :  { %169 = vsyncpa [#allocation3], 1 }
  0x3a   :  { %171 = vsyncpa [#allocation3 + $0x1], 1 }
  0x3b   :  { %172 = vsyncpa [#allocation4], 1 }
  0x3c   :  { %174 = vsyncpa [#allocation4 + $0x1], 1 }

</bundles_post_ra>
